<compile_context>
chip_gen: v7x
topology: tpu7x:2x2x1
jax: 0.10.0
libtpu: 0.0.40
codegen_flags: <defaults>
</compile_context>

<pallas_src>
import functools

import jax
import jax.numpy as jnp
from jax.experimental import pallas as pl
from jax.experimental.pallas import tpu as pltpu


def _round_up(x, m):
    return ((x + m - 1) // m) * m


# -----------------------------------------------------------------------------
# Kernels
# -----------------------------------------------------------------------------
def _linear_kernel_f32_out(x_ref, w_ref, b_ref, o_ref):
    """f32 output: accumulate straight into o_ref (no scratch, no final copy)."""
    k = pl.program_id(2)

    @pl.when(k == 0)
    def _():
        o_ref[...] = jnp.broadcast_to(b_ref[...], o_ref.shape)

    # x cast to the weight dtype (bf16) in-VMEM; MXU matmul with f32 accumulation.
    o_ref[...] += jnp.dot(x_ref[...].astype(w_ref.dtype), w_ref[...],
                          preferred_element_type=jnp.float32)


def _linear_kernel_acc(x_ref, w_ref, b_ref, o_ref, acc_ref):
    """Narrow (e.g. bf16) output: f32 VMEM accumulator, downcast once at the end."""
    k = pl.program_id(2)

    @pl.when(k == 0)
    def _():
        acc_ref[...] = jnp.broadcast_to(b_ref[...], acc_ref.shape)

    acc_ref[...] += jnp.dot(x_ref[...].astype(w_ref.dtype), w_ref[...],
                            preferred_element_type=jnp.float32)

    @pl.when(k == pl.num_programs(2) - 1)
    def _():
        o_ref[...] = acc_ref[...].astype(o_ref.dtype)


# -----------------------------------------------------------------------------
# Wrapper
# -----------------------------------------------------------------------------
_TM_CAP = 1024   # rows per tile     (multiple of 8)
_TN_CAP = 1024   # out cols per tile (multiple of 128)
_TK_CAP = 1024   # reduction per tile (multiple of 128)


def prepare_scoring_params(w, b, compute_dtype=jnp.bfloat16):
    """Cast the persistent parameters ONCE, outside the per-call hot path.

    Passing the returned (w, b) to scoring_network_forward skips the per-call
    HBM read(f32)+write(bf16) pass over W.
    """
    return w.astype(compute_dtype), b.astype(jnp.float32)


@functools.partial(
    jax.jit,
    static_argnames=("block_m", "block_n", "block_k", "compute_dtype", "out_dtype"))
def scoring_network_forward(x, w, b, *, block_m=None, block_n=None, block_k=None,
                            compute_dtype=jnp.bfloat16, out_dtype=None):
    """logits = x @ w + b as a tiled, pipelined Pallas TPU kernel.

    x: [..., D_in], w: [D_in, D_out], b: [D_out].
    Compute is bf16 on the MXU with f32 accumulation; output dtype defaults to
    x.dtype (note: compute_dtype=float32 is supported but runs the MXU at a
    reduced rate).
    """
    orig_shape = x.shape
    D_in = orig_shape[-1]
    x2 = x.reshape(-1, D_in)
    B = x2.shape[0]
    D_in_w, D_out = w.shape
    assert D_in == D_in_w, (D_in, D_in_w)
    assert b.shape[-1] == D_out, (b.shape, D_out)
    out_dtype = x.dtype if out_dtype is None else out_dtype

    # W / b: skip the cast if the caller already prepared them (prepare_scoring_params).
    wc = w if w.dtype == jnp.dtype(compute_dtype) else w.astype(compute_dtype)
    b2 = b.reshape(1, D_out).astype(jnp.float32)

    # ---- tile sizes ---------------------------------------------------------
    # Full-extent whenever a dim fits the cap: full blocks bypass the (8,128)
    # divisibility rule, so the common ScoringNetwork case needs NO padding.
    if block_m is not None:
        tm = _round_up(block_m, 8)
    else:
        tm = B if B <= _TM_CAP else _TM_CAP
    if block_k is not None:
        tk = _round_up(block_k, 128)
    else:
        tk = D_in if D_in <= _TK_CAP else _TK_CAP
    if block_n is not None:
        tn = _round_up(block_n, 128)
    else:
        tn = D_out if D_out <= _TN_CAP else _TN_CAP

    # ---- pad only when a dim exceeds its tile (zero padding is exact) -------
    M, K, N = _round_up(B, tm), _round_up(D_in, tk), _round_up(D_out, tn)
    if (M, K) != (B, D_in):
        x2 = jnp.pad(x2, ((0, M - B), (0, K - D_in)))
    if (K, N) != (D_in, D_out):
        wc = jnp.pad(wc, ((0, K - D_in), (0, N - D_out)))
    if N != D_out:
        b2 = jnp.pad(b2, ((0, 0), (0, N - D_out)))

    grid = (M // tm, N // tn, K // tk)

    in_specs = [
        pl.BlockSpec((tm, tk), lambda i, j, k: (i, k)),   # x tile (cast in-kernel)
        pl.BlockSpec((tk, tn), lambda i, j, k: (k, j)),   # W tile (already bf16)
        pl.BlockSpec((1, tn), lambda i, j, k: (0, j)),    # bias tile
    ]
    out_spec = pl.BlockSpec((tm, tn), lambda i, j, k: (i, j))

    if jnp.dtype(out_dtype) == jnp.float32:
        # Accumulate directly into the (f32) output block; no scratch needed.
        kernel = _linear_kernel_f32_out
        scratch = []
    else:
        kernel = _linear_kernel_acc
        scratch = [pltpu.VMEM((tm, tn), jnp.float32)]

    cost = pl.CostEstimate(
        flops=2 * M * K * N,
        transcendentals=0,
        bytes_accessed=(M * K * x2.dtype.itemsize
                        + K * N * wc.dtype.itemsize
                        + M * N * jnp.dtype(out_dtype).itemsize))

    out_padded = pl.pallas_call(
        kernel,
        out_shape=jax.ShapeDtypeStruct((M, N), out_dtype),
        grid_spec=pltpu.PrefetchScalarGridSpec(
            num_scalar_prefetch=0,
            grid=grid,
            in_specs=in_specs,
            out_specs=out_spec,
            scratch_shapes=scratch),
        compiler_params=pltpu.CompilerParams(
            dimension_semantics=("parallel", "parallel", "arbitrary"),
            # Worst case (1024-class tiles, f32 x / f32 out double-buffered) is
            # ~20-24 MiB: under v7x's 32 MiB scoped budget, well under v5e/v6e.
            vmem_limit_bytes=32 * 1024 * 1024),
        cost_estimate=cost,
    )(x2, wc, b2)

    out = out_padded[:B, :D_out]
    return out.reshape(orig_shape[:-1] + (D_out,))


# -----------------------------------------------------------------------------
# Params / reference / test
# -----------------------------------------------------------------------------
def init_scoring_network_params(key, input_dim, hidden_dim=64, output_dim=None):
    """Deterministic init mirroring nn.Linear default (uniform +-1/sqrt(fan_in))."""
    if output_dim is None:
        output_dim = input_dim
    k_w, k_b = jax.random.split(key)
    bound = 1.0 / jnp.sqrt(jnp.float32(input_dim))
    # PyTorch stores weight as [out, in]; we keep the transposed [in, out] layout.
    w = jax.random.uniform(k_w, (input_dim, output_dim),
                           minval=-bound, maxval=bound, dtype=jnp.float32)
    b = jax.random.uniform(k_b, (output_dim,),
                           minval=-bound, maxval=bound, dtype=jnp.float32)
    return w, b


def _bf16_ref(x, w, b):
    # Same math as torch.nn.Linear forward, with inputs cast to the kernel's
    # bf16 compute dtype (accumulation stays f32 in both paths).
    return jnp.dot(x.astype(jnp.bfloat16).astype(jnp.float32),
                   w.astype(jnp.bfloat16).astype(jnp.float32),
                   precision=jax.lax.Precision.HIGHEST) + b


if __name__ == "__main__":
    key = jax.random.PRNGKey(0)
    k_x, k_p = jax.random.split(key)

    # --- 1) Small shapes consistent with the module (output_dim = input_dim). ---
    # Single full-extent tile, no padding, bias init + accumulate-into-output path.
    batch, input_dim = 8, 32
    output_dim = input_dim
    x = jax.random.normal(k_x, (batch, input_dim), dtype=jnp.float32)
    w, b = init_scoring_network_params(k_p, input_dim, output_dim=output_dim)

    logits = jax.block_until_ready(scoring_network_forward(x, w, b))
    assert logits.shape == (batch, output_dim)
    assert logits.dtype == x.dtype
    ref = _bf16_ref(x, w, b)
    assert jnp.allclose(logits, ref, atol=5e-3, rtol=5e-3), \
        float(jnp.max(jnp.abs(logits - ref)))

    # --- 2) Multi-step (M, N, K) grid with pre-prepared bf16 params. ------------
    # Exercises bias init at k==0, f32 accumulation across k, parallel M/N axes,
    # and the "skip per-call W cast" path.
    B2, Din2, Dout2 = 384, 256, 256
    x2 = jax.random.normal(jax.random.PRNGKey(1), (B2, Din2), dtype=jnp.float32)
    w2, b2 = init_scoring_network_params(jax.random.PRNGKey(2), Din2, output_dim=Dout2)
    w2p, b2p = prepare_scoring_params(w2, b2)       # cast once, outside hot path
    out2 = jax.block_until_ready(
        scoring_network_forward(x2, w2p, b2p,
                                block_m=128, block_n=128, block_k=128))
    ref2 = _bf16_ref(x2, w2, b2)
    assert out2.shape == (B2, Dout2)
    assert jnp.allclose(out2, ref2, atol=5e-2, rtol=5e-3), \
        float(jnp.max(jnp.abs(out2 - ref2)))

    # --- 3) bf16 output path (f32 scratch accumulator + final downcast). --------
    out3 = jax.block_until_ready(
        scoring_network_forward(x2, w2p, b2p, out_dtype=jnp.bfloat16,
                                block_m=128, block_n=128, block_k=128))
    assert out3.dtype == jnp.bfloat16
    assert jnp.allclose(out3.astype(jnp.float32), ref2, atol=6e-2, rtol=2e-2), \
        float(jnp.max(jnp.abs(out3.astype(jnp.float32) - ref2)))

    print("KERNEL_OK")
</pallas_src>

<mosaic_0001>
module attributes {stable_mosaic.version = 11 : i64} {
  func.func @_linear_kernel_f32_out(%arg0: i32, %arg1: i32, %arg2: i32, %arg3: memref<8x32xf32, #tpu.memory_space<vmem>>, %arg4: memref<32x32xbf16, #tpu.memory_space<vmem>>, %arg5: memref<1x32xf32, #tpu.memory_space<vmem>>, %arg6: memref<8x32xf32, #tpu.memory_space<vmem>>) attributes {dimension_semantics = [#tpu.dimension_semantics<parallel>, #tpu.dimension_semantics<parallel>, #tpu.dimension_semantics<arbitrary>], iteration_bounds = array<i64: 1, 1, 1>, scalar_prefetch = 0 : i64, scratch_operands = 0 : i64, tpu.core_type = #tpu.core_type<tc>, window_params = [{transform_indices = @transform_0, window_bounds = array<i64: 8, 32>}, {transform_indices = @transform_1, window_bounds = array<i64: 32, 32>}, {transform_indices = @transform_2, window_bounds = array<i64: 1, 32>}, {transform_indices = @transform_3, window_bounds = array<i64: 8, 32>}]} {
    %c0_i32 = arith.constant 0 : i32
    %0 = arith.cmpi eq, %arg2, %c0_i32 : i32
    %1 = arith.extui %0 : i1 to i32
    %c0_i32_0 = arith.constant 0 : i32
    %2 = arith.cmpi ne, %1, %c0_i32_0 : i32
    scf.if %2 {
      %c0_8 = arith.constant 0 : index
      %c0_9 = arith.constant 0 : index
      %10 = vector.load %arg5[%c0_8, %c0_9] : memref<1x32xf32, #tpu.memory_space<vmem>>, vector<1x32xf32>
      %11 = vector.shape_cast %10 : vector<1x32xf32> to vector<1x32xf32>
      %12 = vector.broadcast %11 : vector<1x32xf32> to vector<8x32xf32>
      %c0_10 = arith.constant 0 : index
      %c0_11 = arith.constant 0 : index
      %13 = vector.load %arg6[%c0_10, %c0_11] : memref<8x32xf32, #tpu.memory_space<vmem>>, vector<8x32xf32>
      tpu.vector_store %arg6[%c0_10, %c0_11], %12 {strides = array<i32>} : memref<8x32xf32, #tpu.memory_space<vmem>>, vector<8x32xf32>,
    } else {
    }
    %c0 = arith.constant 0 : index
    %c0_1 = arith.constant 0 : index
    %3 = vector.load %arg6[%c0, %c0_1] : memref<8x32xf32, #tpu.memory_space<vmem>>, vector<8x32xf32>
    %c0_2 = arith.constant 0 : index
    %c0_3 = arith.constant 0 : index
    %4 = vector.load %arg3[%c0_2, %c0_3] : memref<8x32xf32, #tpu.memory_space<vmem>>, vector<8x32xf32>
    %5 = arith.truncf %4 : vector<8x32xf32> to vector<8x32xbf16>
    %c0_4 = arith.constant 0 : index
    %c0_5 = arith.constant 0 : index
    %6 = vector.load %arg4[%c0_4, %c0_5] : memref<32x32xbf16, #tpu.memory_space<vmem>>, vector<32x32xbf16>
    %cst = arith.constant dense<0.000000e+00> : vector<8x32xf32>
    %7 = tpu.matmul %5, %6, %cst {dimension_numbers = #tpu.dot_dimension_numbers<[1], [0], [0], [1], [0, 0, 1, 1], [], []>} : vector<8x32xbf16>, vector<32x32xbf16>, vector<8x32xf32> -> vector<8x32xf32>
    %8 = arith.addf %3, %7 : vector<8x32xf32>
    %c0_6 = arith.constant 0 : index
    %c0_7 = arith.constant 0 : index
    %9 = vector.load %arg6[%c0_6, %c0_7] : memref<8x32xf32, #tpu.memory_space<vmem>>, vector<8x32xf32>
    tpu.vector_store %arg6[%c0_6, %c0_7], %8 {strides = array<i32>} : memref<8x32xf32, #tpu.memory_space<vmem>>, vector<8x32xf32>,
    return
  }
  func.func @transform_0(%arg0: i32, %arg1: i32, %arg2: i32) -> (i32, i32) {
    %c0_i32 = arith.constant 0 : i32
    return %arg0, %arg2 : i32, i32
  }
  func.func @transform_1(%arg0: i32, %arg1: i32, %arg2: i32) -> (i32, i32) {
    %c0_i32 = arith.constant 0 : i32
    return %arg2, %arg1 : i32, i32
  }
  func.func @transform_2(%arg0: i32, %arg1: i32, %arg2: i32) -> (i32, i32) {
    %c0_i32 = arith.constant 0 : i32
    %c0_i32_0 = arith.constant 0 : i32
    return %c0_i32, %arg1 : i32, i32
  }
  func.func @transform_3(%arg0: i32, %arg1: i32, %arg2: i32) -> (i32, i32) {
    %c0_i32 = arith.constant 0 : i32
    return %arg0, %arg1 : i32, i32
  }
}

</mosaic_0001>

<bundles_post_ra>
// kernel: scoring_network_forward.1
= control target key start
LH: loop header
LB: loop body
LE: loop exit
PB: predicated region body
PF: predicated region fallthrough
CT: control target
= control target key end

     0   :  { %v152_v1 = vmov 0.0   ;;  %vm153_vm0 = vmmov 0   ;;  %vm27_vm1 = vcmask 261120   ;;  %s202_s0 = inlined_call_operand.vmem [shape: f32[8,32], index: 0, kind: input, shape index: {}]   ;;  %s203_s1 = inlined_call_operand.vmem [shape: bf16[32,32], index: 1, kind: input, shape index: {}]   ;;  %s204_s2 = inlined_call_operand.vmem [shape: f32[1,32], index: 2, kind: input, shape index: {}]   ;;  %s205_s3 = inlined_call_operand.hbm [shape: f32[8,32], index: 3, kind: output, shape index: {}]  }
   0x1   :  { %v126_v0 = vld [vmem:[%s203_s1] sm:$0xff]   ;;  %115 = vmatprep.subr.bf16.mxu0 %v152_v1  ;;  %v127_v2 = vld [vmem:[%s203_s1 + $0x8] sm:$0xff]   ;;  %119 = vmatprep.mubr.msk.bf16.mxu0 %vm153_vm0, %v152_v1 }
   0x2   :  { %116 = vmatpush3.bf16.msra.mxu0 %v126_v0  ;;  %v108_v3 = vld [vmem:[%s204_s2] ss:$0 sm:$0xff] }
   0x3   :  { %v30_v4 = vld [vmem:[%s202_s0] sm:$0xff] }
   0x4   :  { %8 = vsyncpa [#allocation3], 0  ;;  %117 = vmatprep.subr.bf16.mxu0 %v152_v1  ;;  %28 = vst.msk [vmem:[#allocation2] sm:$0xff] %vm27_vm1, %v108_v3  ;;  %v31_v5 = vpack.c.bf16 %v30_v4, %v30_v4  ;;  %s154_s1 = smov [#allocation2]  }
   0x5   :  { %s100_s20 = sshll.u32 %s154_s1, 4  ;;  %s101_s20 = int_to_ptr.vmem [resolvable:$true] %s100_s20 }
   0x6   :  { %118 = vmatpush3.bf16.msra.mxu0 %v127_v2  ;;  %s128_s0 = scalar_lea.vmem %s101_s20, 128  ;;  %p133_p1 = scmp.lt.s32.totalorder %s101_s20, %s101_s20 }
   0x7   :  { %p129_p0 = scmp.ne.s32.totalorder %s101_s20, %s128_s0  ;;  %p134_p2 = scmp.lt.s32.totalorder %s128_s0, %s128_s0 }
   0x9   :  { %120 = vmatmul.mubr.msk.bf16.vlgmr.msra.gmra.mrb[0].mxu0 %vm27_vm1, %v31_v5  ;;  %p135_p3 = por %p134_p2, %p133_p1 }
   0xb   :  { %v29_v6 = vld [vmem:[#allocation2] sm:$0xff]  ;;  %p136_p4 = pnand %p135_p3, %p129_p0 }
  0xdc   :  { %v86_v7 = vpop.f32.mrb[0].mxu0 }
  0xdd   :  { %v92_v8 = vadd.f32 %v86_v7, %v29_v6  ;;  %v121_v9 = vpop.f32.mrb[1].mxu0 }
  0xde   :  { %v89_v10 = vpop.f32.mrb[2].mxu0 }
  0xdf   :  { %93 = vst.msk [vmem:[#allocation2] sm:$0xff] %vm27_vm1, %v92_v8  ;;  %v122_v11 = vpop.f32.mrb[3].mxu0 }
  0xe0   :  { %139 = shalt.err (!%p136_p4)
}
  0xe1   :  { %s140_s22 = scalar_lea.hbm %s205_s3, 128 }
  0xe2   :  { %p141_p5 = scmp.ne.s32.totalorder %s205_s3, %s140_s22  ;;  %p144_p6 = scmp.lt.u32.totalorder %s140_s22, %s205_s3 }
  0xe4   :  { %p146_p7 = pnand %p144_p6, %p141_p5 }
  0xe6   :  { %149 = shalt.err (!%p146_p7)
}
  0xe7   :  { %103 = dma.vmem_to_hbm [thread:$0]  %s101_s20, 128, %s205_s3, [#allocation3]  }
  0xe8   :  { %150 = dma.done.wait [#allocation3], 128  }
  0xe9   :  { %151 = vsyncadd [#allocation3], 4294967168 }
  0xea   :  { %107 = vsyncpa [#allocation3], 1 }

</bundles_post_ra>
